<compile_context>
chip_gen: v7x
topology: tpu7x:2x2x1
jax: 0.10.0
libtpu: 0.0.40
codegen_flags: <defaults>
</compile_context>

<pallas_src>
import jax
import jax.numpy as jnp
from jax import lax
from jax.experimental import pallas as pl
from jax.experimental.pallas import tpu as pltpu


def _largest_aligned_divisor(n, cap, align):
    """Largest divisor of n that is a multiple of `align` and <= cap (n % align == 0)."""
    best = align
    d = align
    cap = min(cap, n)
    while d <= cap:
        if n % d == 0:
            best = d
        d += align
    return best


def token_and_position_embedding(x, token_emb, pos_emb, *,
                                 target_block_bytes=1 << 20,
                                 vmem_table_budget_bytes=None):
    """out[b, s, :] = token_emb[x[b, s], :] + pos_emb[s, :]  (TokenAndPositionEmbedding.forward)"""
    B, S = x.shape
    V, E = token_emb.shape
    maxlen = pos_emb.shape[0]
    assert S <= maxlen, f"sequence length {S} exceeds maxlen {maxlen}"

    out_dtype = jnp.promote_types(token_emb.dtype, pos_emb.dtype)
    token_emb = token_emb.astype(out_dtype)
    pos_emb = pos_emb.astype(out_dtype)
    isz = jnp.dtype(out_dtype).itemsize
    sublane = {4: 8, 2: 16, 1: 32}[isz]          # min sublane tile per dtype width
    assert S % sublane == 0, f"S={S} must be a multiple of {sublane} for dtype {out_dtype}"

    # ---------------- tile selection (large, memory-bound-friendly blocks) -------------
    TS = _largest_aligned_divisor(S, 512, sublane)      # seq tile, up to 512 rows
    row_bytes = E * isz
    divs = [d for d in range(1, B + 1) if B % d == 0]
    TB = 1
    for d in divs:                                       # grow batch blocking toward ~1 MiB/step
        if d * TS * row_bytes <= target_block_bytes:
            TB = d
    # Keep >= 2 grid steps when possible so the v7x megacore (2 TCs) has work to split.
    while TB > 1 and (B // TB) * (S // TS) < 2:
        TB = max(d for d in divs if d < TB)
    NB, NS = B // TB, S // TS

    # ---------------- generation-aware VMEM budgeting ----------------------------------
    try:
        vmem_cap = int(pltpu.get_tpu_info().vmem_capacity_bytes)   # 128 MiB v5e/v6e, 64 MiB v7x
    except Exception:
        vmem_cap = 64 * 1024 * 1024                                 # conservative fallback
    if vmem_table_budget_bytes is None:
        vmem_table_budget_bytes = vmem_cap // 3
    table_bytes = V * E * isz
    use_vmem_table = table_bytes <= vmem_table_budget_bytes

    # Flat ids -> SMEM via scalar prefetch; clamp so the gather can never read OOB.
    ids = jnp.clip(x.astype(jnp.int32), 0, V - 1).reshape(B * S)

    out_block_bytes = TB * TS * row_bytes
    pos_block_bytes = TS * row_bytes

    # ---------------- fast path: token table resident in VMEM --------------------------
    def kernel_vmem(ids_ref, pos_ref, tok_ref, o_ref, gathered):
        # ids_ref  : (B*S,)      int32 SMEM (scalar prefetch)
        # pos_ref  : (TS, E)     VMEM tile of pos_emb
        # tok_ref  : (V, E)      VMEM-resident table (constant block index -> loaded once)
        # o_ref    : (TB, TS, E) VMEM output tile
        # gathered : (TB, TS, E) VMEM scratch
        bb = pl.program_id(0)
        sb = pl.program_id(1)
        unroll = min(TS, 8)
        for r in range(TB):                                   # static, small
            flat_base = (bb * TB + r) * S + sb * TS

            def gather_row(i, carry):
                tid = ids_ref[flat_base + i]
                gathered[r, pl.ds(i, 1), :] = tok_ref[pl.ds(tid, 1), :]
                return carry

            lax.fori_loop(0, TS, gather_row, 0, unroll=unroll)
        # One big vectorized add + lane-dense store for the whole block.
        o_ref[...] = (gathered[...] + pos_ref[...][None, :, :]).astype(o_ref.dtype)

    # ---------------- big-table path: chunked, double-buffered HBM row gather ----------
    C = 16 if TS % 16 == 0 else sublane          # chunk rows; divides TS, multiple of 8
    assert TS % C == 0 and V >= C
    NCH = (TB * TS) // C                         # chunks per grid step

    def kernel_hbm(ids_ref, pos_ref, tok_hbm, o_ref, row_buf, row_sem):
        # ids_ref : (B*S,)     int32 SMEM (scalar prefetch)
        # pos_ref : (TS, E)    VMEM tile of pos_emb
        # tok_hbm : (V, E)     raw HBM ref (manual DMA gather)
        # o_ref   : (TB,TS,E)  VMEM output tile
        # row_buf : (2, C, E)  VMEM double buffer for gathered rows
        # row_sem : (2,)       DMA semaphores, one per buffer slot
        bb = pl.program_id(0)
        sb = pl.program_id(1)

        def issue(k, slot):
            # chunk k covers seq rows [s0, s0+C) of batch row r within this tile
            r = (k * C) // TS
            s0 = (k * C) % TS
            base = (bb * TB + r) * S + sb * TS + s0
            for j in range(C):                               # static unroll, C in {8, 16}
                tid = ids_ref[base + j]
                pltpu.make_async_copy(
                    tok_hbm.at[pl.ds(tid, 1), :],
                    row_buf.at[slot, pl.ds(j, 1), :],
                    row_sem.at[slot],                        # all C copies share one semaphore
                ).start()

        issue(0, 0)                                          # prime slot 0

        def chunk_body(k, carry):
            slot = k % 2

            @pl.when(k + 1 < NCH)
            def _():
                issue(k + 1, 1 - slot)                       # prefetch next chunk into other slot

            # Single aggregated wait: the C row copies each signalled row_sem[slot] with
            # E*isz bytes; one (C, E)-shaped descriptor waits for exactly their total.
            pltpu.make_async_copy(
                tok_hbm.at[pl.ds(0, C), :], row_buf.at[slot], row_sem.at[slot]
            ).wait()

            r = (k * C) // TS
            s0 = pl.multiple_of((k * C) % TS, C)             # sublane-aligned dynamic start
            o_ref[r, pl.ds(s0, C), :] = (
                row_buf[slot] + pos_ref[pl.ds(s0, C), :]
            ).astype(o_ref.dtype)
            return carry

        lax.fori_loop(0, NCH, chunk_body, 0)

    # ---------------- specs & call ------------------------------------------------------
    pos_spec = pl.BlockSpec((TS, E), lambda bb, sb, ids: (sb, 0))
    out_spec = pl.BlockSpec((TB, TS, E), lambda bb, sb, ids: (bb, sb, 0))

    if use_vmem_table:
        tok_spec = pl.BlockSpec((V, E), lambda bb, sb, ids: (0, 0))   # resident, loaded once
        kernel = kernel_vmem
        scratch = [pltpu.VMEM((TB, TS, E), out_dtype)]
        vmem_need = (2 * table_bytes + 2 * out_block_bytes + 2 * pos_block_bytes
                     + TB * TS * row_bytes)
    else:
        tok_spec = pl.BlockSpec(memory_space=pl.ANY)                  # table stays in HBM
        kernel = kernel_hbm
        scratch = [pltpu.VMEM((2, C, E), out_dtype), pltpu.SemaphoreType.DMA((2,))]
        vmem_need = 2 * out_block_bytes + 2 * pos_block_bytes + 2 * C * row_bytes

    vmem_limit = int(min(max(32 * 1024 * 1024, vmem_need + (4 << 20)),
                         max(vmem_cap - (4 << 20), 32 * 1024 * 1024)))

    grid_spec = pltpu.PrefetchScalarGridSpec(
        num_scalar_prefetch=1,                 # ids -> SMEM
        grid=(NB, NS),                         # batch axis outermost (megacore split)
        in_specs=[pos_spec, tok_spec],
        out_specs=out_spec,
        scratch_shapes=scratch,
    )

    return pl.pallas_call(
        kernel,
        out_shape=jax.ShapeDtypeStruct((B, S, E), out_dtype),
        grid_spec=grid_spec,
        compiler_params=pltpu.CompilerParams(
            dimension_semantics=("parallel", "parallel"),
            vmem_limit_bytes=vmem_limit,
        ),
    )(ids, pos_emb, token_emb)


if __name__ == "__main__":
    # Small shapes consistent with the module's forward.
    B, S = 2, 8
    maxlen = 16
    vocab_size = 64
    embed_dim = 128

    key = jax.random.PRNGKey(0)
    k_ids, k_tok, k_pos = jax.random.split(key, 3)

    token_emb = jax.random.normal(k_tok, (vocab_size, embed_dim), dtype=jnp.float32)
    pos_emb = jax.random.normal(k_pos, (maxlen, embed_dim), dtype=jnp.float32)
    x = jax.random.randint(k_ids, (B, S), 0, vocab_size, dtype=jnp.int32)

    ref = token_emb[x] + pos_emb[:S][None, :, :]

    # Fast path: table resident in VMEM (table is 32 KiB here).
    out_vmem = jax.block_until_ready(token_and_position_embedding(x, token_emb, pos_emb))
    assert out_vmem.shape == (B, S, embed_dim)
    assert jnp.allclose(out_vmem, ref, atol=1e-5, rtol=1e-5)

    # Big-table path: force the chunked, double-buffered HBM row gather and verify it too.
    out_hbm = jax.block_until_ready(
        token_and_position_embedding(x, token_emb, pos_emb, vmem_table_budget_bytes=0))
    assert jnp.allclose(out_hbm, ref, atol=1e-5, rtol=1e-5)

    print("KERNEL_OK")
</pallas_src>

<mosaic_0001>
module attributes {stable_mosaic.version = 11 : i64} {
  func.func @kernel_vmem(%arg0: i32, %arg1: i32, %arg2: memref<16xi32, #tpu.memory_space<smem>>, %arg3: memref<8x128xf32, #tpu.memory_space<vmem>>, %arg4: memref<64x128xf32, #tpu.memory_space<vmem>>, %arg5: memref<1x8x128xf32, #tpu.memory_space<vmem>>, %arg6: memref<1x8x128xf32, #tpu.memory_space<vmem>>) attributes {dimension_semantics = [#tpu.dimension_semantics<parallel>, #tpu.dimension_semantics<parallel>], iteration_bounds = array<i64: 2, 1>, scalar_prefetch = 1 : i64, scratch_operands = 1 : i64, tpu.core_type = #tpu.core_type<tc>, window_params = [{transform_indices = @transform_0, window_bounds = array<i64: 8, 128>}, {pipeline_mode = #tpu.pipeline_mode<synchronous>, transform_indices = @transform_1, window_bounds = array<i64: 64, 128>}, {transform_indices = @transform_2, window_bounds = array<i64: 1, 8, 128>}]} {
    %c1_i32 = arith.constant 1 : i32
    %0 = arith.muli %arg0, %c1_i32 : i32
    %c0_i32 = arith.constant 0 : i32
    %1 = arith.addi %0, %c0_i32 : i32
    %c8_i32 = arith.constant 8 : i32
    %2 = arith.muli %1, %c8_i32 : i32
    %c8_i32_0 = arith.constant 8 : i32
    %3 = arith.muli %arg1, %c8_i32_0 : i32
    %4 = arith.addi %2, %3 : i32
    %c0_i32_1 = arith.constant 0 : i32
    %5 = arith.addi %4, %c0_i32_1 : i32
    %6 = arith.index_cast %5 : i32 to index
    %7 = memref.load %arg2[%6] : memref<16xi32, #tpu.memory_space<smem>>
    %8 = arith.index_cast %7 : i32 to index
    %c0 = arith.constant 0 : index
    %9 = vector.load %arg4[%8, %c0] : memref<64x128xf32, #tpu.memory_space<vmem>>, vector<1x128xf32>
    %c0_2 = arith.constant 0 : index
    %10 = arith.index_cast %c0_i32_1 : i32 to index
    %c0_3 = arith.constant 0 : index
    %11 = vector.load %arg6[%c0_2, %10, %c0_3] : memref<1x8x128xf32, #tpu.memory_space<vmem>>, vector<1x1x128xf32>
    %12 = vector.shape_cast %11 : vector<1x1x128xf32> to vector<1x128xf32>
    %13 = vector.shape_cast %9 : vector<1x128xf32> to vector<1x1x128xf32>
    tpu.vector_store %arg6[%c0_2, %10, %c0_3], %13 {strides = array<i32>} : memref<1x8x128xf32, #tpu.memory_space<vmem>>, vector<1x1x128xf32>,
    %c1_i32_4 = arith.constant 1 : i32
    %14 = arith.addi %4, %c1_i32_4 : i32
    %15 = arith.index_cast %14 : i32 to index
    %16 = memref.load %arg2[%15] : memref<16xi32, #tpu.memory_space<smem>>
    %17 = arith.index_cast %16 : i32 to index
    %c0_5 = arith.constant 0 : index
    %18 = vector.load %arg4[%17, %c0_5] : memref<64x128xf32, #tpu.memory_space<vmem>>, vector<1x128xf32>
    %c0_6 = arith.constant 0 : index
    %19 = arith.index_cast %c1_i32_4 : i32 to index
    %c0_7 = arith.constant 0 : index
    %20 = vector.load %arg6[%c0_6, %19, %c0_7] : memref<1x8x128xf32, #tpu.memory_space<vmem>>, vector<1x1x128xf32>
    %21 = vector.shape_cast %20 : vector<1x1x128xf32> to vector<1x128xf32>
    %22 = vector.shape_cast %18 : vector<1x128xf32> to vector<1x1x128xf32>
    tpu.vector_store %arg6[%c0_6, %19, %c0_7], %22 {strides = array<i32>} : memref<1x8x128xf32, #tpu.memory_space<vmem>>, vector<1x1x128xf32>,
    %c2_i32 = arith.constant 2 : i32
    %23 = arith.addi %4, %c2_i32 : i32
    %24 = arith.index_cast %23 : i32 to index
    %25 = memref.load %arg2[%24] : memref<16xi32, #tpu.memory_space<smem>>
    %26 = arith.index_cast %25 : i32 to index
    %c0_8 = arith.constant 0 : index
    %27 = vector.load %arg4[%26, %c0_8] : memref<64x128xf32, #tpu.memory_space<vmem>>, vector<1x128xf32>
    %c0_9 = arith.constant 0 : index
    %28 = arith.index_cast %c2_i32 : i32 to index
    %c0_10 = arith.constant 0 : index
    %29 = vector.load %arg6[%c0_9, %28, %c0_10] : memref<1x8x128xf32, #tpu.memory_space<vmem>>, vector<1x1x128xf32>
    %30 = vector.shape_cast %29 : vector<1x1x128xf32> to vector<1x128xf32>
    %31 = vector.shape_cast %27 : vector<1x128xf32> to vector<1x1x128xf32>
    tpu.vector_store %arg6[%c0_9, %28, %c0_10], %31 {strides = array<i32>} : memref<1x8x128xf32, #tpu.memory_space<vmem>>, vector<1x1x128xf32>,
    %c3_i32 = arith.constant 3 : i32
    %32 = arith.addi %4, %c3_i32 : i32
    %33 = arith.index_cast %32 : i32 to index
    %34 = memref.load %arg2[%33] : memref<16xi32, #tpu.memory_space<smem>>
    %35 = arith.index_cast %34 : i32 to index
    %c0_11 = arith.constant 0 : index
    %36 = vector.load %arg4[%35, %c0_11] : memref<64x128xf32, #tpu.memory_space<vmem>>, vector<1x128xf32>
    %c0_12 = arith.constant 0 : index
    %37 = arith.index_cast %c3_i32 : i32 to index
    %c0_13 = arith.constant 0 : index
    %38 = vector.load %arg6[%c0_12, %37, %c0_13] : memref<1x8x128xf32, #tpu.memory_space<vmem>>, vector<1x1x128xf32>
    %39 = vector.shape_cast %38 : vector<1x1x128xf32> to vector<1x128xf32>
    %40 = vector.shape_cast %36 : vector<1x128xf32> to vector<1x1x128xf32>
    tpu.vector_store %arg6[%c0_12, %37, %c0_13], %40 {strides = array<i32>} : memref<1x8x128xf32, #tpu.memory_space<vmem>>, vector<1x1x128xf32>,
    %c4_i32 = arith.constant 4 : i32
    %41 = arith.addi %4, %c4_i32 : i32
    %42 = arith.index_cast %41 : i32 to index
    %43 = memref.load %arg2[%42] : memref<16xi32, #tpu.memory_space<smem>>
    %44 = arith.index_cast %43 : i32 to index
    %c0_14 = arith.constant 0 : index
    %45 = vector.load %arg4[%44, %c0_14] : memref<64x128xf32, #tpu.memory_space<vmem>>, vector<1x128xf32>
    %c0_15 = arith.constant 0 : index
    %46 = arith.index_cast %c4_i32 : i32 to index
    %c0_16 = arith.constant 0 : index
    %47 = vector.load %arg6[%c0_15, %46, %c0_16] : memref<1x8x128xf32, #tpu.memory_space<vmem>>, vector<1x1x128xf32>
    %48 = vector.shape_cast %47 : vector<1x1x128xf32> to vector<1x128xf32>
    %49 = vector.shape_cast %45 : vector<1x128xf32> to vector<1x1x128xf32>
    tpu.vector_store %arg6[%c0_15, %46, %c0_16], %49 {strides = array<i32>} : memref<1x8x128xf32, #tpu.memory_space<vmem>>, vector<1x1x128xf32>,
    %c5_i32 = arith.constant 5 : i32
    %50 = arith.addi %4, %c5_i32 : i32
    %51 = arith.index_cast %50 : i32 to index
    %52 = memref.load %arg2[%51] : memref<16xi32, #tpu.memory_space<smem>>
    %53 = arith.index_cast %52 : i32 to index
    %c0_17 = arith.constant 0 : index
    %54 = vector.load %arg4[%53, %c0_17] : memref<64x128xf32, #tpu.memory_space<vmem>>, vector<1x128xf32>
    %c0_18 = arith.constant 0 : index
    %55 = arith.index_cast %c5_i32 : i32 to index
    %c0_19 = arith.constant 0 : index
    %56 = vector.load %arg6[%c0_18, %55, %c0_19] : memref<1x8x128xf32, #tpu.memory_space<vmem>>, vector<1x1x128xf32>
    %57 = vector.shape_cast %56 : vector<1x1x128xf32> to vector<1x128xf32>
    %58 = vector.shape_cast %54 : vector<1x128xf32> to vector<1x1x128xf32>
    tpu.vector_store %arg6[%c0_18, %55, %c0_19], %58 {strides = array<i32>} : memref<1x8x128xf32, #tpu.memory_space<vmem>>, vector<1x1x128xf32>,
    %c6_i32 = arith.constant 6 : i32
    %59 = arith.addi %4, %c6_i32 : i32
    %60 = arith.index_cast %59 : i32 to index
    %61 = memref.load %arg2[%60] : memref<16xi32, #tpu.memory_space<smem>>
    %62 = arith.index_cast %61 : i32 to index
    %c0_20 = arith.constant 0 : index
    %63 = vector.load %arg4[%62, %c0_20] : memref<64x128xf32, #tpu.memory_space<vmem>>, vector<1x128xf32>
    %c0_21 = arith.constant 0 : index
    %64 = arith.index_cast %c6_i32 : i32 to index
    %c0_22 = arith.constant 0 : index
    %65 = vector.load %arg6[%c0_21, %64, %c0_22] : memref<1x8x128xf32, #tpu.memory_space<vmem>>, vector<1x1x128xf32>
    %66 = vector.shape_cast %65 : vector<1x1x128xf32> to vector<1x128xf32>
    %67 = vector.shape_cast %63 : vector<1x128xf32> to vector<1x1x128xf32>
    tpu.vector_store %arg6[%c0_21, %64, %c0_22], %67 {strides = array<i32>} : memref<1x8x128xf32, #tpu.memory_space<vmem>>, vector<1x1x128xf32>,
    %c7_i32 = arith.constant 7 : i32
    %68 = arith.addi %4, %c7_i32 : i32
    %69 = arith.index_cast %68 : i32 to index
    %70 = memref.load %arg2[%69] : memref<16xi32, #tpu.memory_space<smem>>
    %71 = arith.index_cast %70 : i32 to index
    %c0_23 = arith.constant 0 : index
    %72 = vector.load %arg4[%71, %c0_23] : memref<64x128xf32, #tpu.memory_space<vmem>>, vector<1x128xf32>
    %c0_24 = arith.constant 0 : index
    %73 = arith.index_cast %c7_i32 : i32 to index
    %c0_25 = arith.constant 0 : index
    %74 = vector.load %arg6[%c0_24, %73, %c0_25] : memref<1x8x128xf32, #tpu.memory_space<vmem>>, vector<1x1x128xf32>
    %75 = vector.shape_cast %74 : vector<1x1x128xf32> to vector<1x128xf32>
    %76 = vector.shape_cast %72 : vector<1x128xf32> to vector<1x1x128xf32>
    tpu.vector_store %arg6[%c0_24, %73, %c0_25], %76 {strides = array<i32>} : memref<1x8x128xf32, #tpu.memory_space<vmem>>, vector<1x1x128xf32>,
    %c8_i32_26 = arith.constant 8 : i32
    %c0_27 = arith.constant 0 : index
    %c0_28 = arith.constant 0 : index
    %c0_29 = arith.constant 0 : index
    %77 = vector.load %arg6[%c0_27, %c0_28, %c0_29] : memref<1x8x128xf32, #tpu.memory_space<vmem>>, vector<1x8x128xf32>
    %c0_30 = arith.constant 0 : index
    %c0_31 = arith.constant 0 : index
    %78 = vector.load %arg3[%c0_30, %c0_31] : memref<8x128xf32, #tpu.memory_space<vmem>>, vector<8x128xf32>
    %79 = vector.shape_cast %78 : vector<8x128xf32> to vector<1x8x128xf32>
    %80 = arith.addf %77, %79 : vector<1x8x128xf32>
    %c0_32 = arith.constant 0 : index
    %c0_33 = arith.constant 0 : index
    %c0_34 = arith.constant 0 : index
    %81 = vector.load %arg5[%c0_32, %c0_33, %c0_34] : memref<1x8x128xf32, #tpu.memory_space<vmem>>, vector<1x8x128xf32>
    tpu.vector_store %arg5[%c0_32, %c0_33, %c0_34], %80 {strides = array<i32>} : memref<1x8x128xf32, #tpu.memory_space<vmem>>, vector<1x8x128xf32>,
    return
  }
  func.func @transform_0(%arg0: i32, %arg1: i32, %arg2: memref<16xi32, #tpu.memory_space<smem>>) -> (i32, i32) {
    %c0_i32 = arith.constant 0 : i32
    %c0_i32_0 = arith.constant 0 : i32
    return %arg1, %c0_i32 : i32, i32
  }
  func.func @transform_1(%arg0: i32, %arg1: i32, %arg2: memref<16xi32, #tpu.memory_space<smem>>) -> (i32, i32) {
    %c0_i32 = arith.constant 0 : i32
    %c0_i32_0 = arith.constant 0 : i32
    %c0_i32_1 = arith.constant 0 : i32
    return %c0_i32, %c0_i32_0 : i32, i32
  }
  func.func @transform_2(%arg0: i32, %arg1: i32, %arg2: memref<16xi32, #tpu.memory_space<smem>>) -> (i32, i32, i32) {
    %c0_i32 = arith.constant 0 : i32
    %c0_i32_0 = arith.constant 0 : i32
    return %arg0, %arg1, %c0_i32 : i32, i32, i32
  }
}

</mosaic_0001>

<bundles_post_ra>
// kernel: tpu_custom_call.1
= control target key start
LH: loop header
LB: loop body
LE: loop exit
PB: predicated region body
PF: predicated region fallthrough
CT: control target
= control target key end

     0   :  { %s798_s0 = inlined_call_operand.hbm [shape: s32[16], index: 0, kind: input, shape index: {}]   ;;  %s799_s1 = inlined_call_operand.hbm [shape: f32[16,128], index: 1, kind: input, shape index: {}]   ;;  %s800_s2 = inlined_call_operand.hbm [shape: f32[64,128], index: 2, kind: input, shape index: {}]   ;;  %s801_s3 = inlined_call_operand.hbm [shape: f32[2,8,128], index: 3, kind: output, shape index: {}]  }
   0x1   :  { %s418_s14 = scalar_lea.hbm %s798_s0, 16 }
   0x2   :  { %p419_p0 = scmp.ne.s32.totalorder %s798_s0, %s418_s14  ;;  %p422_p1 = scmp.lt.u32.totalorder %s418_s14, %s798_s0 }
   0x4   :  { %p424_p2 = pnand %p422_p1, %p419_p0 }
   0x6   :  { %427 = shalt.err (!%p424_p2)  }
   0x7   :  { %s574_s19 = smov [#allocation4]  }
   0x8   :  { %9 = dma.hbm_to_smem %s798_s0, 16, %s574_s19, [#allocation3] }
   0x9   :  { %536 = dma.done.wait [#allocation3], 16 }
   0xa   :  { %537 = vsyncadd [#allocation3], 4294967280 }
   0xb   :  { %11 = sfence }
   0xc   :  { %12 = vsyncpa [#allocation6], 0 }
   0xd   :  { %13 = vsyncpa [#allocation9], 0 }
   0xe   :  { %14 = vsyncpa [#allocation7], 0 }
   0xf   :  { %16 = vsyncpa [#allocation7 + $0x1], 0  ;;  %s612_s22 = smov 0   ;;  %s614_s23 = smov 0  }
  0x10   :  { %s616_s24 = smov 0   ;;  %s618_s25 = smov 0  }
  0x11   :  { %s620_s26 = smov 0   ;;  %s622_s27 = smov 0  }
  0x12 LB: > { %s325_s0 = sadd.s32 4294967295, %s572_s27   ;;  %s326_s28 = sadd.s32 4294967294, %s572_s27   ;;  %s572_s27 = sphi %s622_s27, %s22_s27   ;;  %s568_s26 = sphi %s620_s26, %s819_s26   ;;  %s564_s25 = sphi %s618_s25, %s818_s25   ;;  %s560_s24 = sphi %s616_s24, %s817_s24   ;;  %s556_s23 = sphi %s614_s23, %s816_s23   ;;  %s552_s22 = sphi %s612_s22, %s815_s22  }
  0x13   : > { %s34_s29 = sadd.s32 1, %s568_s26  ;;  %s90_s30 = sadd.s32 1, %s560_s24 }
  0x14   : > { %p36_p3 = scmp.ge.s32.totalorder %s34_s29, 2  ;;  %p100_p4 = scmp.ne.s32.totalorder %s560_s24, %s556_s23 }
  0x15   : > { %p101_p5 = scmp.eq.s32.totalorder %s325_s0, 1  ;;  %p106_p6 = scmp.ne.s32.totalorder %s556_s23, %s552_s22 }
  0x16   : > { %s821_s29 = smov (%p36_p3, %s34_s29), 0  ;;  %p107_p8 = scmp.eq.s32.totalorder %s326_s28, 1 }
  0x17   : > { %p652_p7 = por %p101_p5, %p100_p4  ;;  %s85_s5 = ssub.s32 %s568_s26, %s821_s29 }
  0x18   : > { %p327_p9 = scmp.ge.s32.totalorder %s572_s27, 1  ;;  %p88_p10 = scmp.eq.s32.totalorder %s85_s5, 0 }
  0x19   : > { %s806_s4 = scalar_select %p652_p7, 1, 0 }
  0x1a   : > { %p659_p11 = por %p107_p8, %p106_p6  ;;  %p114_p12 = scmp.lt.s32.totalorder %s572_s27, 3 }
  0x1b   : > { %s665_s7 = scalar_select %p88_p10, %s560_s24, %s90_s30  }
  0x1c   : > { %s807_s6 = scalar_select %p659_p11, 1, 0 }
  0x1d   : > { %p667_p13 = pnand %p327_p9, %p114_p12  ;;  %p671_p0 = scmp.eq.s32.totalorder %s325_s0, 0 }
  0x1e   : > { %s575_s10 = smov [#allocation5]   ;;  %s576_s12 = smov [#allocation8]  }
  0x1f   : > { %s808_s8 = scalar_select %p667_p13, 1, 0 }
  0x20   : > { %s809_s9 = scalar_select %p671_p0, 1, 0 }
  0x21   : > { %p349_p1 = pneg %p667_p13  ;;  %s129_s11 = sshll.u32 %s575_s10, 4  ;;  %s130_s11 = int_to_ptr.vmem [resolvable:$true] %s129_s11 }
  0x22   : > { %s139_s13 = sshll.u32 %s576_s12, 4  ;;  %s428_s17 = scalar_lea.hbm %s799_s1, 128  ;;  %s683_s13 = int_to_ptr.vmem [resolvable:$true] %s139_s13 }
  0x23   : > { %p679_p2 = pnand %p671_p0, %p349_p1  ;;  %p429_p3 = scmp.ne.s32.totalorder %s799_s1, %s428_s17 }
  0x24   : > { %s433_s0 = scalar_lea.hbm %s799_s1, 256  ;;  %p435_p9 = scmp.lt.u32.totalorder %s428_s17, %s799_s1 }
  0x25   : > { %p430_p4 = pneg %p679_p2  ;;  %p434_p8 = scmp.lt.u32.totalorder %s433_s0, %s428_s17 }
  0x27   : > { %p431_p5 = pnand %p430_p4, %p429_p3  ;;  %p436_p10 = por %p435_p9, %p434_p8 }
  0x29   : > { %p432_p6 = pneg %p431_p5 }
  0x2b   : > { %p437_p12 = pnand %p436_p10, %p432_p6 }
  0x2d   : > { %440 = shalt.err (!%p437_p12)
}
  0x2e   : > { %s441_s5 = scalar_lea.vmem %s130_s11, 128  ;;  %p449_p5 = scmp.lt.s32.totalorder %s130_s11, %s130_s11 }
  0x2f   : > { %p442_p1 = scmp.ne.s32.totalorder %s130_s11, %s441_s5  ;;  %p450_p7 = scmp.lt.s32.totalorder %s441_s5, %s441_s5 }
  0x31   : > { %p444_p11 = pnand %p442_p1, %p430_p4  ;;  %p451_p0 = por %p450_p7, %p449_p5 }
  0x33   : > { %p445_p3 = pneg %p444_p11 }
  0x35   : > { %p452_p13 = pnand %p451_p0, %p445_p3 }
  0x37   : > { %455 = shalt.err (!%p452_p13)
}
  0x38   : > { %352 = dma.hbm_to_vmem [thread:$0]  (!%p679_p2), %s799_s1, 128, %s130_s11, [#allocation6]  }
  0x39   : > { %s456_s17 = scalar_lea.hbm %s800_s2, 1024 }
  0x3a   : > { %p457_p11 = scmp.ne.s32.totalorder %s800_s2, %s456_s17  ;;  %p463_p13 = scmp.lt.u32.totalorder %s456_s17, %s800_s2 }
  0x3c   : > { %p459_p7 = pnand %p457_p11, %p430_p4 }
  0x3e   : > { %p460_p0 = pneg %p459_p7 }
  0x40   : > { %p465_p6 = pnand %p463_p13, %p460_p0 }
  0x42   : > { %468 = shalt.err (!%p465_p6)
}
  0x43   : > { %s469_s11 = scalar_lea.vmem %s683_s13, 1024  ;;  %p477_p12 = scmp.lt.s32.totalorder %s683_s13, %s683_s13 }
  0x44   : > { %p470_p8 = scmp.ne.s32.totalorder %s683_s13, %s469_s11  ;;  %p478_p1 = scmp.lt.s32.totalorder %s469_s11, %s469_s11 }
  0x46   : > { %p472_p9 = pnand %p470_p8, %p430_p4  ;;  %p479_p3 = por %p478_p1, %p477_p12 }
  0x48   : > { %p473_p10 = pneg %p472_p9 }
  0x4a   : > { %p480_p5 = pnand %p479_p3, %p473_p10 }
  0x4c   : > { %483 = shalt.err (!%p480_p5)
}
  0x4d   : > { %s577_s0 = smov 128   ;;  %s578_s28 = smov 8  }
  0x4e   : > { %355 = dma.hbm_to_vmem [thread:$0]  (!%p679_p2), %s800_s2, 1024, %s683_s13, [#allocation9], %s577_s0, %s577_s0, %s578_s28  }
  0x4f   : > { %p811_p11 = scmp.ne.s32.totalorder %s808_s8, 0 }
  0x50   : > { %p812_p4 = scmp.ne.s32.totalorder (!%p811_p11), %s809_s9, 0 }
  0x51   : > { %155 = sbr.rel (%p811_p11) target bundleno = 132 (0x84), region = 28 }
  0x58   : > { %539 = dma.done.wait (%p812_p4), [#allocation6], 128  }
  0x59   : > { %541 = vsyncadd (%p812_p4), [#allocation6], 4294967168 }
  0x5a   : > { %543 = dma.done.wait (%p812_p4), [#allocation9], 1024  }
  0x5b   : > { %545 = vsyncadd (%p812_p4), [#allocation9], 4294966272  ;;  %s334_s14 = sshll.u32 %s564_s25, 3  ;;  %v219_v8 = vld [vmem:[#allocation5] sm:$0xff]  ;;  %p813_p7 = scmp.ne.s32.totalorder %s806_s4, 0 }
  0x5c   : > { %s179_s10 = sld [smem:[#allocation4 + %s334_s14]]  ;;  %s183_s12 = sadd.s32 1, %s334_s14 }
  0x5d   : > { %s184_s13 = sld [smem:[#allocation4 + %s183_s12]]  ;;  %s188_s15 = sadd.s32 2, %s334_s14 }
  0x5e   : > { %s189_s8 = sld [smem:[#allocation4 + %s188_s15]]  ;;  %s193_s16 = sadd.s32 3, %s334_s14 }
  0x5f   : > { %s194_s17 = sld [smem:[#allocation4 + %s193_s16]]  ;;  %s198_s18 = sadd.s32 4, %s334_s14 }
  0x60   : > { %s199_s19 = sld [smem:[#allocation4 + %s198_s18]]  ;;  %s203_s20 = sadd.s32 5, %s334_s14 }
  0x61   : > { %s204_s21 = sld [smem:[#allocation4 + %s203_s20]]  ;;  %s208_s11 = sadd.s32 6, %s334_s14 }
  0x62   : > { %s209_s0 = sld [smem:[#allocation4 + %s208_s11]]  ;;  %s180_s28 = scalar_lea.vmem [#allocation8], %s179_s10 }
  0x63   : > { %v181_v0 = vld [vmem:[%s180_s28] sm:$0x1]  ;;  %s213_s30 = sadd.s32 7, %s334_s14  ;;  %s185_s9 = scalar_lea.vmem [#allocation8], %s184_s13 }
  0x64   : > { %182 = vst [vmem:[#allocation2] sm:$0x1] %v181_v0  ;;  %v186_v1 = vld [vmem:[%s185_s9] sm:$0x1]  ;;  %s214_s5 = sld [smem:[#allocation4 + %s213_s30]]  ;;  %s190_s12 = scalar_lea.vmem [#allocation8], %s189_s8 }
  0x65   : > { %187 = vst [vmem:[#allocation2 + $0x1] sm:$0x1] %v186_v1  ;;  %v191_v2 = vld [vmem:[%s190_s12] sm:$0x1]  ;;  %s195_s15 = scalar_lea.vmem [#allocation8], %s194_s17  ;;  %s173_s10 = sand.u32 1, %s556_s23  }
  0x66   : > { %192 = vst [vmem:[#allocation2 + $0x2] sm:$0x1] %v191_v2  ;;  %v196_v3 = vld [vmem:[%s195_s15] sm:$0x1]  ;;  %s200_s16 = scalar_lea.vmem [#allocation8], %s199_s19  ;;  %s333_s8 = sshll.u32 %s173_s10, 3 }
  0x67   : > { %197 = vst [vmem:[#allocation2 + $0x3] sm:$0x1] %v196_v3  ;;  %v201_v4 = vld [vmem:[%s200_s16] sm:$0x1]  ;;  %s205_s18 = scalar_lea.vmem [#allocation8], %s204_s21  ;;  %s175_s17 = scalar_lea.vmem [#allocation10], %s333_s8 }
  0x68   : > { %202 = vst [vmem:[#allocation2 + $0x4] sm:$0x1] %v201_v4  ;;  %v206_v5 = vld [vmem:[%s205_s18] sm:$0x1]  ;;  %s210_s14 = scalar_lea.vmem [#allocation8], %s209_s0  ;;  %s237_s20 = sshll.u32 %s175_s17, 4  ;;  %s748_s20 = int_to_ptr.vmem [resolvable:$true] %s237_s20 }
  0x69   : > { %207 = vst [vmem:[#allocation2 + $0x5] sm:$0x1] %v206_v5  ;;  %v211_v6 = vld [vmem:[%s210_s14] sm:$0x1]  ;;  %s336_s11 = sshll.u32 %s564_s25, 7  ;;  %s223_s28 = scalar_lea.sflag [#allocation7], %s173_s10 }
  0x6a   : > { %212 = vst [vmem:[#allocation2 + $0x6] sm:$0x1] %v211_v6  ;;  %s215_s13 = scalar_lea.vmem [#allocation8], %s214_s5  ;;  %s753_s0 = scalar_lea.hbm %s801_s3, %s336_s11 }
  0x6b   : > { %v216_v7 = vld [vmem:[%s215_s13] sm:$0x1]  ;;  %s484_s30 = scalar_lea.vmem %s748_s20, 128  ;;  %s579_s25 = smov [#allocation10]  }
  0x6c   : > { %217 = vst [vmem:[#allocation2 + $0x7] sm:$0x1] %v216_v7  ;;  %p485_p2 = scmp.ne.s32.totalorder %s748_s20, %s484_s30  ;;  %s488_s9 = sshll.u32 %s579_s25, 4  ;;  %s489_s9 = int_to_ptr.vmem [resolvable:$false] %s488_s9 }
  0x6d   : > { %s490_s5 = scalar_lea.vmem %s489_s9, 256  ;;  %p491_p6 = scmp.lt.s32.totalorder %s748_s20, %s489_s9 }
  0x6e   : > { %p486_p0 = pnand %p485_p2, %p813_p7  ;;  %p492_p8 = scmp.lt.s32.totalorder %s490_s5, %s484_s30 }
  0x70   : > { %p487_p13 = pneg %p486_p0  ;;  %p493_p9 = por %p492_p8, %p491_p6 }
  0x72   : > { %p494_p10 = pnand %p493_p9, %p487_p13 }
  0x73   : > { %v218_v9 = vld [vmem:[#allocation2] sm:$0xff] }
  0x74   : > { %v220_v10 = vadd.f32 %v219_v8, %v218_v9 }
  0x76   : > { %221 = vst [vmem:[%s175_s17] sm:$0xff] %v220_v10 }
  0x77   : > { %497 = shalt.err (!%p494_p10)
}
  0x78   : > { %s498_s12 = scalar_lea.hbm %s753_s0, 128  ;;  %s502_s18 = scalar_lea.hbm %s801_s3, 256 }
  0x79   : > { %p499_p12 = scmp.ne.s32.totalorder %s753_s0, %s498_s12  ;;  %p503_p5 = scmp.lt.u32.totalorder %s753_s0, %s801_s3 }
  0x7a   : > { %p504_p11 = scmp.lt.u32.totalorder %s502_s18, %s498_s12  ;;  %p506_p2 = scmp.lt.u32.totalorder %s498_s12, %s753_s0 }
  0x7b   : > { %p500_p1 = pnand %p499_p12, %p813_p7 }
  0x7c   : > { %p505_p4 = por %p504_p11, %p503_p5 }
  0x7d   : > { %p501_p3 = pneg %p500_p1 }
  0x7e   : > { %p507_p0 = por %p506_p2, %p505_p4 }
  0x80   : > { %p508_p13 = pnand %p507_p0, %p501_p3 }
  0x82   : > { %511 = shalt.err (!%p508_p13)
}
  0x83   : > { %347 = dma.vmem_to_hbm [thread:$0]  (%p813_p7), %s748_s20, 128, %s753_s0, %s223_s28  }
  0x84 PF: > { %p364_p6 = scmp.ge.s32.totalorder %s572_s27, 2  ;;  %s249_s13 = sand.u32 1, %s552_s22  }
  0x85   : > { %p814_p8 = scmp.ne.s32.totalorder %s807_s6, 0  ;;  %s250_s8 = scalar_lea.sflag [#allocation7], %s249_s13 }
  0x87   : > { %p357_p9 = pnand %p364_p6, %p814_p8 }
  0x89   : > { %547 = dma.done.wait (!%p357_p9), %s250_s8, 128  }
  0x8a   : > { %549 = vsyncadd (!%p357_p9), %s250_s8, 4294967168  ;;  %s22_s27 = sadd.s32 1, %s572_s27   ;;  %s815_s22 = smov %s556_s23 }
  0x8b   : > { %p19_p10 = scmp.ge.s32.totalorder %s22_s27, 4   ;;  %s816_s23 = smov %s560_s24 }
  0x8c   : > { %s817_s24 = smov %s665_s7  ;;  %s818_s25 = smov %s568_s26 }
  0x8d   : > { %s819_s26 = smov %s821_s29  ;;  %21 = sbr.rel (!%p19_p10) target bundleno = 18 (0x12), region = 78 }
  0x94   :  { %255 = vsyncpa [#allocation6], 1 }
  0x95   :  { %257 = vsyncpa [#allocation6 + $0x1], 1 }
  0x96   :  { %258 = vsyncpa [#allocation9], 1 }
  0x97   :  { %259 = vsyncpa [#allocation7], 1 }
  0x98   :  { %261 = vsyncpa [#allocation7 + $0x1], 1 }

</bundles_post_ra>
